<compile_context>
chip_gen: v6e
topology: v6e:2x2x1
jax: 0.10.0
libtpu: 0.0.40
codegen_flags: <defaults>
</compile_context>

<pallas_src>
import math

import jax
import jax.numpy as jnp
from jax.experimental import pallas as pl
from jax.experimental.pallas import tpu as pltpu


def _cast(x, dtype):
    x = jnp.asarray(x)
    return x if x.dtype == dtype else x.astype(dtype)


def _round_up(x, m):
    return ((x + m - 1) // m) * m


def _cores_per_chip():
    # v7x exposes 2 TensorCores per chip; v5e/v6e have 1.  Best effort only —
    # getting this wrong costs a micro-optimization, never correctness.
    try:
        kind = jax.devices()[0].device_kind.lower()
    except Exception:
        return 1
    return 2 if ("v7" in kind or "7x" in kind) else 1


def _pick_batch_tiling(batch, features, nodes, itemsize, batch_tile):
    b_lane = _round_up(max(batch, 1), 128)          # lane-dense output stores
    if batch_tile is None:
        # Target >= ~2 MiB of weight traffic per grid step so the DMA, not the
        # ~0.35 us fixed per-step overhead, dominates; cap at 8192 lanes so
        # in-kernel intermediates stay modest.
        bt = (2 * 1024 * 1024) // (features * nodes * itemsize)
        bt = min(b_lane, min(8192, max(128, _round_up(bt, 128))))
        cores = _cores_per_chip()
        if cores > 1 and b_lane >= cores * 128:
            # Keep >= `cores` "parallel" grid steps so a v7x megacore can shard
            # the batch across both TensorCores.
            bt = min(bt, _round_up(pl.cdiv(b_lane, cores), 128))
    else:
        bt = _round_up(batch_tile, 128)
    b_pad = _round_up(b_lane, bt)
    return bt, b_pad


# --------------------------------- kernel ---------------------------------

def _decoder_kernel(v_ref, ht_ref, w_ref, out_ref):
    # v_ref  : SMEM [F]         reduction weights (resident for the whole call)
    # ht_ref : VMEM [N, N]      H^T (constant index_map -> resident across grid)
    # w_ref  : VMEM [F, N, bt]  this tile's decoder weights, feature-major
    # out_ref: VMEM [N, bt]     node-major output, instances on the lane axis
    num_features = w_ref.shape[0]
    ht = ht_ref[...]
    for f in range(num_features):               # F is small (8): static unroll
        yf = jnp.dot(ht, w_ref[f],
                     preferred_element_type=jnp.float32,
                     precision=jax.lax.Precision.HIGHEST)        # [N, bt]
        term = v_ref[f] * jnp.maximum(yf, 0.0)                   # VPU scale
        if f == 0:
            out_ref[...] = term
        else:
            out_ref[...] += term                                 # VPU add, VMEM acc


# ------------------------------ batched forward ------------------------------

def graph_decoder_forward_batched(Wb, H, v, *, batch_tile=None,
                                  compute_dtype=jnp.float32):
    """Many GraphDecoder instances sharing the fixed filter H and vector v.

    Wb: [B, F, N], H: [N, N], v: [F]  ->  out: [N, B] with
        out[:, b] == relu(Wb[b] @ H).T @ v

    The output is node-major (instances on the 128-wide lane axis) so every
    in-kernel store is lane-dense; transposing to a [B, N] view is wrapper-side
    layout plumbing.  compute_dtype=jnp.bfloat16 halves Wb's HBM->VMEM traffic
    (accumulation stays f32); use the default f32 when 1e-5 accuracy is needed.
    """
    B, F, N = Wb.shape
    Wb = _cast(Wb, compute_dtype)
    H = _cast(H, compute_dtype)
    v = _cast(v, jnp.float32)

    itemsize = jnp.dtype(compute_dtype).itemsize
    bt, b_pad = _pick_batch_tiling(B, F, N, itemsize, batch_tile)
    if b_pad != B:
        Wb = jnp.pad(Wb, ((0, b_pad - B), (0, 0), (0, 0)))
    num_tiles = b_pad // bt

    # Layout plumbing outside the hot kernel: feature-major weights with the
    # instance (batch) axis last, i.e. on the lane axis.
    # TODO(synk): if the producer of Wb can emit [F, N, B] directly, drop this
    # transpose (it is one extra HBM read+write of Wb).
    wft3 = jnp.transpose(Wb, (1, 2, 0))        # [F, N, b_pad]
    ht = H.T                                   # [N, N]

    out = pl.pallas_call(
        _decoder_kernel,
        out_shape=jax.ShapeDtypeStruct((N, b_pad), jnp.float32),
        grid=(num_tiles,),
        in_specs=[
            pl.BlockSpec(memory_space=pltpu.MemorySpace.SMEM),   # v, resident
            pl.BlockSpec((N, N), lambda i: (0, 0)),              # H^T, resident
            pl.BlockSpec((F, N, bt), lambda i: (0, 0, i)),       # W tile (lane-dense)
        ],
        out_specs=pl.BlockSpec((N, bt), lambda i: (0, i)),       # lane-dense store
        compiler_params=pltpu.CompilerParams(
            dimension_semantics=("parallel",)),                  # megacore on v7x
    )(v, ht, wft3)
    return out[:, :B]


# --------------------------- single-instance forward ---------------------------

def graph_decoder_forward(W, H, v, *, compute_dtype=jnp.float32):
    """W: [F, N], H: [N, N], v: [F] -> [N]   (== relu(W @ H).T @ v).

    Routed through the batched kernel: a dedicated single-instance pallas_call
    would be pure launch overhead for a ~4 KFLOP op.
    """
    return graph_decoder_forward_batched(
        W[None], H, v, compute_dtype=compute_dtype)[:, 0]


if __name__ == "__main__":
    key = jax.random.PRNGKey(0)
    N = 16          # number of graph nodes
    features = 8    # number of decoder features
    scale_std = 0.01
    k1, k2, k3 = jax.random.split(key, 3)

    # Deterministic synthetic fixed low-pass graph filter H (symmetric, row-normalized).
    A = jax.random.uniform(k1, (N, N), dtype=jnp.float32)
    A = 0.5 * (A + A.T)
    H = A / jnp.linalg.norm(A, axis=1, keepdims=True)

    # Conv1d weight [F, N, 1] ~ N(0, std) with the kernel dim squeezed -> [F, N].
    std = scale_std / math.sqrt(N)
    W = std * jax.random.normal(k2, (features, N), dtype=jnp.float32)

    # v = ones(F)/sqrt(F) with the second half (from ceil(F/2)) negated.
    v = jnp.ones((features,), jnp.float32) / math.sqrt(features)
    half = math.ceil(features / 2)
    v = v.at[half:].multiply(-1.0)

    hp = jax.lax.Precision.HIGHEST

    # --- single forward (faithful to GraphDecoder.forward) ---
    out = jax.block_until_ready(graph_decoder_forward(W, H, v))
    ref = jnp.dot(jnp.maximum(jnp.dot(W, H, precision=hp), 0.0).T, v, precision=hp)
    assert out.shape == (N,)
    assert jnp.allclose(out, ref, atol=1e-5, rtol=1e-4)

    # --- batched forward: auto tiling, B not a multiple of 128 (exercises padding) ---
    B = 200
    Wb = std * jax.random.normal(k3, (B, features, N), dtype=jnp.float32)
    out_nb = jax.block_until_ready(graph_decoder_forward_batched(Wb, H, v))
    y_ref = jnp.maximum(jnp.einsum("bfk,kn->bfn", Wb, H, precision=hp), 0.0)
    ref_nb = jnp.einsum("bfn,f->nb", y_ref, v, precision=hp)
    assert out_nb.shape == (N, B)
    assert jnp.allclose(out_nb, ref_nb, atol=1e-5, rtol=1e-4)

    # --- explicit multi-step grid (the path large B takes) ---
    out_tiled = jax.block_until_ready(
        graph_decoder_forward_batched(Wb, H, v, batch_tile=128))
    assert jnp.allclose(out_tiled, ref_nb, atol=1e-5, rtol=1e-4)

    # --- bf16 operand path (halves Wb HBM traffic; f32 accumulation) ---
    out_bf16 = jax.block_until_ready(
        graph_decoder_forward_batched(Wb, H, v, compute_dtype=jnp.bfloat16))
    Wb_bf = Wb.astype(jnp.bfloat16).astype(jnp.float32)
    H_bf = H.astype(jnp.bfloat16).astype(jnp.float32)
    y_bf = jnp.maximum(jnp.einsum("bfk,kn->bfn", Wb_bf, H_bf, precision=hp), 0.0)
    ref_bf = jnp.einsum("bfn,f->nb", y_bf, v, precision=hp)
    assert jnp.allclose(out_bf16, ref_bf, atol=1e-6, rtol=1e-4)   # kernel vs same-input ref
    assert jnp.allclose(out_bf16, ref_nb, atol=5e-4, rtol=5e-2)   # vs true f32 ref (loose)

    print("KERNEL_OK")
</pallas_src>

<mosaic_0001>
module attributes {stable_mosaic.version = 11 : i64} {
  func.func @_decoder_kernel(%arg0: i32, %arg1: memref<8xf32, #tpu.memory_space<smem>>, %arg2: memref<16x16xf32, #tpu.memory_space<vmem>>, %arg3: memref<8x16x128xf32, #tpu.memory_space<vmem>>, %arg4: memref<16x128xf32, #tpu.memory_space<vmem>>) attributes {dimension_semantics = [#tpu.dimension_semantics<parallel>], iteration_bounds = array<i64: 1>, scalar_prefetch = 0 : i64, scratch_operands = 0 : i64, tpu.core_type = #tpu.core_type<tc>, window_params = [{transform_indices = @transform_0, window_bounds = array<i64: 8>}, {pipeline_mode = #tpu.pipeline_mode<synchronous>, transform_indices = @transform_1, window_bounds = array<i64: 16, 16>}, {transform_indices = @transform_2, window_bounds = array<i64: 8, 16, 128>}, {transform_indices = @transform_3, window_bounds = array<i64: 16, 128>}]} {
    %c0 = arith.constant 0 : index
    %c0_0 = arith.constant 0 : index
    %0 = vector.load %arg2[%c0, %c0_0] : memref<16x16xf32, #tpu.memory_space<vmem>>, vector<16x16xf32>
    %c0_1 = arith.constant 0 : index
    %c0_2 = arith.constant 0 : index
    %c0_3 = arith.constant 0 : index
    %1 = vector.load %arg3[%c0_1, %c0_2, %c0_3] : memref<8x16x128xf32, #tpu.memory_space<vmem>>, vector<1x16x128xf32>
    %2 = vector.shape_cast %1 : vector<1x16x128xf32> to vector<16x128xf32>
    %cst = arith.constant dense<0.000000e+00> : vector<16x128xf32>
    %3 = tpu.matmul %0, %2, %cst {dimension_numbers = #tpu.dot_dimension_numbers<[1], [0], [0], [1], [0, 0, 1, 1], [], []>, precision = #tpu.contract_precision<fp32>} : vector<16x16xf32>, vector<16x128xf32>, vector<16x128xf32> -> vector<16x128xf32>
    %c0_4 = arith.constant 0 : index
    %4 = memref.load %arg1[%c0_4] : memref<8xf32, #tpu.memory_space<smem>>
    %cst_5 = arith.constant 0.000000e+00 : f32
    %5 = vector.broadcast %cst_5 : f32 to vector<16x128xf32>
    %6 = arith.maximumf %3, %5 : vector<16x128xf32>
    %7 = vector.broadcast %4 : f32 to vector<16x128xf32>
    %8 = arith.mulf %7, %6 : vector<16x128xf32>
    %c0_6 = arith.constant 0 : index
    %c0_7 = arith.constant 0 : index
    %9 = vector.load %arg4[%c0_6, %c0_7] : memref<16x128xf32, #tpu.memory_space<vmem>>, vector<16x128xf32>
    tpu.vector_store %arg4[%c0_6, %c0_7], %8 {strides = array<i32>} : memref<16x128xf32, #tpu.memory_space<vmem>>, vector<16x128xf32>,
    %c1 = arith.constant 1 : index
    %c0_8 = arith.constant 0 : index
    %c0_9 = arith.constant 0 : index
    %10 = vector.load %arg3[%c1, %c0_8, %c0_9] : memref<8x16x128xf32, #tpu.memory_space<vmem>>, vector<1x16x128xf32>
    %11 = vector.shape_cast %10 : vector<1x16x128xf32> to vector<16x128xf32>
    %cst_10 = arith.constant dense<0.000000e+00> : vector<16x128xf32>
    %12 = tpu.matmul %0, %11, %cst_10 {dimension_numbers = #tpu.dot_dimension_numbers<[1], [0], [0], [1], [0, 0, 1, 1], [], []>, precision = #tpu.contract_precision<fp32>} : vector<16x16xf32>, vector<16x128xf32>, vector<16x128xf32> -> vector<16x128xf32>
    %c1_11 = arith.constant 1 : index
    %13 = memref.load %arg1[%c1_11] : memref<8xf32, #tpu.memory_space<smem>>
    %cst_12 = arith.constant 0.000000e+00 : f32
    %14 = vector.broadcast %cst_12 : f32 to vector<16x128xf32>
    %15 = arith.maximumf %12, %14 : vector<16x128xf32>
    %16 = vector.broadcast %13 : f32 to vector<16x128xf32>
    %17 = arith.mulf %16, %15 : vector<16x128xf32>
    %c0_13 = arith.constant 0 : index
    %c0_14 = arith.constant 0 : index
    %18 = vector.load %arg4[%c0_13, %c0_14] : memref<16x128xf32, #tpu.memory_space<vmem>>, vector<16x128xf32>
    %19 = arith.addf %18, %17 : vector<16x128xf32>
    %c0_15 = arith.constant 0 : index
    %c0_16 = arith.constant 0 : index
    %20 = vector.load %arg4[%c0_15, %c0_16] : memref<16x128xf32, #tpu.memory_space<vmem>>, vector<16x128xf32>
    tpu.vector_store %arg4[%c0_15, %c0_16], %19 {strides = array<i32>} : memref<16x128xf32, #tpu.memory_space<vmem>>, vector<16x128xf32>,
    %c2 = arith.constant 2 : index
    %c0_17 = arith.constant 0 : index
    %c0_18 = arith.constant 0 : index
    %21 = vector.load %arg3[%c2, %c0_17, %c0_18] : memref<8x16x128xf32, #tpu.memory_space<vmem>>, vector<1x16x128xf32>
    %22 = vector.shape_cast %21 : vector<1x16x128xf32> to vector<16x128xf32>
    %cst_19 = arith.constant dense<0.000000e+00> : vector<16x128xf32>
    %23 = tpu.matmul %0, %22, %cst_19 {dimension_numbers = #tpu.dot_dimension_numbers<[1], [0], [0], [1], [0, 0, 1, 1], [], []>, precision = #tpu.contract_precision<fp32>} : vector<16x16xf32>, vector<16x128xf32>, vector<16x128xf32> -> vector<16x128xf32>
    %c2_20 = arith.constant 2 : index
    %24 = memref.load %arg1[%c2_20] : memref<8xf32, #tpu.memory_space<smem>>
    %cst_21 = arith.constant 0.000000e+00 : f32
    %25 = vector.broadcast %cst_21 : f32 to vector<16x128xf32>
    %26 = arith.maximumf %23, %25 : vector<16x128xf32>
    %27 = vector.broadcast %24 : f32 to vector<16x128xf32>
    %28 = arith.mulf %27, %26 : vector<16x128xf32>
    %c0_22 = arith.constant 0 : index
    %c0_23 = arith.constant 0 : index
    %29 = vector.load %arg4[%c0_22, %c0_23] : memref<16x128xf32, #tpu.memory_space<vmem>>, vector<16x128xf32>
    %30 = arith.addf %29, %28 : vector<16x128xf32>
    %c0_24 = arith.constant 0 : index
    %c0_25 = arith.constant 0 : index
    %31 = vector.load %arg4[%c0_24, %c0_25] : memref<16x128xf32, #tpu.memory_space<vmem>>, vector<16x128xf32>
    tpu.vector_store %arg4[%c0_24, %c0_25], %30 {strides = array<i32>} : memref<16x128xf32, #tpu.memory_space<vmem>>, vector<16x128xf32>,
    %c3 = arith.constant 3 : index
    %c0_26 = arith.constant 0 : index
    %c0_27 = arith.constant 0 : index
    %32 = vector.load %arg3[%c3, %c0_26, %c0_27] : memref<8x16x128xf32, #tpu.memory_space<vmem>>, vector<1x16x128xf32>
    %33 = vector.shape_cast %32 : vector<1x16x128xf32> to vector<16x128xf32>
    %cst_28 = arith.constant dense<0.000000e+00> : vector<16x128xf32>
    %34 = tpu.matmul %0, %33, %cst_28 {dimension_numbers = #tpu.dot_dimension_numbers<[1], [0], [0], [1], [0, 0, 1, 1], [], []>, precision = #tpu.contract_precision<fp32>} : vector<16x16xf32>, vector<16x128xf32>, vector<16x128xf32> -> vector<16x128xf32>
    %c3_29 = arith.constant 3 : index
    %35 = memref.load %arg1[%c3_29] : memref<8xf32, #tpu.memory_space<smem>>
    %cst_30 = arith.constant 0.000000e+00 : f32
    %36 = vector.broadcast %cst_30 : f32 to vector<16x128xf32>
    %37 = arith.maximumf %34, %36 : vector<16x128xf32>
    %38 = vector.broadcast %35 : f32 to vector<16x128xf32>
    %39 = arith.mulf %38, %37 : vector<16x128xf32>
    %c0_31 = arith.constant 0 : index
    %c0_32 = arith.constant 0 : index
    %40 = vector.load %arg4[%c0_31, %c0_32] : memref<16x128xf32, #tpu.memory_space<vmem>>, vector<16x128xf32>
    %41 = arith.addf %40, %39 : vector<16x128xf32>
    %c0_33 = arith.constant 0 : index
    %c0_34 = arith.constant 0 : index
    %42 = vector.load %arg4[%c0_33, %c0_34] : memref<16x128xf32, #tpu.memory_space<vmem>>, vector<16x128xf32>
    tpu.vector_store %arg4[%c0_33, %c0_34], %41 {strides = array<i32>} : memref<16x128xf32, #tpu.memory_space<vmem>>, vector<16x128xf32>,
    %c4 = arith.constant 4 : index
    %c0_35 = arith.constant 0 : index
    %c0_36 = arith.constant 0 : index
    %43 = vector.load %arg3[%c4, %c0_35, %c0_36] : memref<8x16x128xf32, #tpu.memory_space<vmem>>, vector<1x16x128xf32>
    %44 = vector.shape_cast %43 : vector<1x16x128xf32> to vector<16x128xf32>
    %cst_37 = arith.constant dense<0.000000e+00> : vector<16x128xf32>
    %45 = tpu.matmul %0, %44, %cst_37 {dimension_numbers = #tpu.dot_dimension_numbers<[1], [0], [0], [1], [0, 0, 1, 1], [], []>, precision = #tpu.contract_precision<fp32>} : vector<16x16xf32>, vector<16x128xf32>, vector<16x128xf32> -> vector<16x128xf32>
    %c4_38 = arith.constant 4 : index
    %46 = memref.load %arg1[%c4_38] : memref<8xf32, #tpu.memory_space<smem>>
    %cst_39 = arith.constant 0.000000e+00 : f32
    %47 = vector.broadcast %cst_39 : f32 to vector<16x128xf32>
    %48 = arith.maximumf %45, %47 : vector<16x128xf32>
    %49 = vector.broadcast %46 : f32 to vector<16x128xf32>
    %50 = arith.mulf %49, %48 : vector<16x128xf32>
    %c0_40 = arith.constant 0 : index
    %c0_41 = arith.constant 0 : index
    %51 = vector.load %arg4[%c0_40, %c0_41] : memref<16x128xf32, #tpu.memory_space<vmem>>, vector<16x128xf32>
    %52 = arith.addf %51, %50 : vector<16x128xf32>
    %c0_42 = arith.constant 0 : index
    %c0_43 = arith.constant 0 : index
    %53 = vector.load %arg4[%c0_42, %c0_43] : memref<16x128xf32, #tpu.memory_space<vmem>>, vector<16x128xf32>
    tpu.vector_store %arg4[%c0_42, %c0_43], %52 {strides = array<i32>} : memref<16x128xf32, #tpu.memory_space<vmem>>, vector<16x128xf32>,
    %c5 = arith.constant 5 : index
    %c0_44 = arith.constant 0 : index
    %c0_45 = arith.constant 0 : index
    %54 = vector.load %arg3[%c5, %c0_44, %c0_45] : memref<8x16x128xf32, #tpu.memory_space<vmem>>, vector<1x16x128xf32>
    %55 = vector.shape_cast %54 : vector<1x16x128xf32> to vector<16x128xf32>
    %cst_46 = arith.constant dense<0.000000e+00> : vector<16x128xf32>
    %56 = tpu.matmul %0, %55, %cst_46 {dimension_numbers = #tpu.dot_dimension_numbers<[1], [0], [0], [1], [0, 0, 1, 1], [], []>, precision = #tpu.contract_precision<fp32>} : vector<16x16xf32>, vector<16x128xf32>, vector<16x128xf32> -> vector<16x128xf32>
    %c5_47 = arith.constant 5 : index
    %57 = memref.load %arg1[%c5_47] : memref<8xf32, #tpu.memory_space<smem>>
    %cst_48 = arith.constant 0.000000e+00 : f32
    %58 = vector.broadcast %cst_48 : f32 to vector<16x128xf32>
    %59 = arith.maximumf %56, %58 : vector<16x128xf32>
    %60 = vector.broadcast %57 : f32 to vector<16x128xf32>
    %61 = arith.mulf %60, %59 : vector<16x128xf32>
    %c0_49 = arith.constant 0 : index
    %c0_50 = arith.constant 0 : index
    %62 = vector.load %arg4[%c0_49, %c0_50] : memref<16x128xf32, #tpu.memory_space<vmem>>, vector<16x128xf32>
    %63 = arith.addf %62, %61 : vector<16x128xf32>
    %c0_51 = arith.constant 0 : index
    %c0_52 = arith.constant 0 : index
    %64 = vector.load %arg4[%c0_51, %c0_52] : memref<16x128xf32, #tpu.memory_space<vmem>>, vector<16x128xf32>
    tpu.vector_store %arg4[%c0_51, %c0_52], %63 {strides = array<i32>} : memref<16x128xf32, #tpu.memory_space<vmem>>, vector<16x128xf32>,
    %c6 = arith.constant 6 : index
    %c0_53 = arith.constant 0 : index
    %c0_54 = arith.constant 0 : index
    %65 = vector.load %arg3[%c6, %c0_53, %c0_54] : memref<8x16x128xf32, #tpu.memory_space<vmem>>, vector<1x16x128xf32>
    %66 = vector.shape_cast %65 : vector<1x16x128xf32> to vector<16x128xf32>
    %cst_55 = arith.constant dense<0.000000e+00> : vector<16x128xf32>
    %67 = tpu.matmul %0, %66, %cst_55 {dimension_numbers = #tpu.dot_dimension_numbers<[1], [0], [0], [1], [0, 0, 1, 1], [], []>, precision = #tpu.contract_precision<fp32>} : vector<16x16xf32>, vector<16x128xf32>, vector<16x128xf32> -> vector<16x128xf32>
    %c6_56 = arith.constant 6 : index
    %68 = memref.load %arg1[%c6_56] : memref<8xf32, #tpu.memory_space<smem>>
    %cst_57 = arith.constant 0.000000e+00 : f32
    %69 = vector.broadcast %cst_57 : f32 to vector<16x128xf32>
    %70 = arith.maximumf %67, %69 : vector<16x128xf32>
    %71 = vector.broadcast %68 : f32 to vector<16x128xf32>
    %72 = arith.mulf %71, %70 : vector<16x128xf32>
    %c0_58 = arith.constant 0 : index
    %c0_59 = arith.constant 0 : index
    %73 = vector.load %arg4[%c0_58, %c0_59] : memref<16x128xf32, #tpu.memory_space<vmem>>, vector<16x128xf32>
    %74 = arith.addf %73, %72 : vector<16x128xf32>
    %c0_60 = arith.constant 0 : index
    %c0_61 = arith.constant 0 : index
    %75 = vector.load %arg4[%c0_60, %c0_61] : memref<16x128xf32, #tpu.memory_space<vmem>>, vector<16x128xf32>
    tpu.vector_store %arg4[%c0_60, %c0_61], %74 {strides = array<i32>} : memref<16x128xf32, #tpu.memory_space<vmem>>, vector<16x128xf32>,
    %c7 = arith.constant 7 : index
    %c0_62 = arith.constant 0 : index
    %c0_63 = arith.constant 0 : index
    %76 = vector.load %arg3[%c7, %c0_62, %c0_63] : memref<8x16x128xf32, #tpu.memory_space<vmem>>, vector<1x16x128xf32>
    %77 = vector.shape_cast %76 : vector<1x16x128xf32> to vector<16x128xf32>
    %cst_64 = arith.constant dense<0.000000e+00> : vector<16x128xf32>
    %78 = tpu.matmul %0, %77, %cst_64 {dimension_numbers = #tpu.dot_dimension_numbers<[1], [0], [0], [1], [0, 0, 1, 1], [], []>, precision = #tpu.contract_precision<fp32>} : vector<16x16xf32>, vector<16x128xf32>, vector<16x128xf32> -> vector<16x128xf32>
    %c7_65 = arith.constant 7 : index
    %79 = memref.load %arg1[%c7_65] : memref<8xf32, #tpu.memory_space<smem>>
    %cst_66 = arith.constant 0.000000e+00 : f32
    %80 = vector.broadcast %cst_66 : f32 to vector<16x128xf32>
    %81 = arith.maximumf %78, %80 : vector<16x128xf32>
    %82 = vector.broadcast %79 : f32 to vector<16x128xf32>
    %83 = arith.mulf %82, %81 : vector<16x128xf32>
    %c0_67 = arith.constant 0 : index
    %c0_68 = arith.constant 0 : index
    %84 = vector.load %arg4[%c0_67, %c0_68] : memref<16x128xf32, #tpu.memory_space<vmem>>, vector<16x128xf32>
    %85 = arith.addf %84, %83 : vector<16x128xf32>
    %c0_69 = arith.constant 0 : index
    %c0_70 = arith.constant 0 : index
    %86 = vector.load %arg4[%c0_69, %c0_70] : memref<16x128xf32, #tpu.memory_space<vmem>>, vector<16x128xf32>
    tpu.vector_store %arg4[%c0_69, %c0_70], %85 {strides = array<i32>} : memref<16x128xf32, #tpu.memory_space<vmem>>, vector<16x128xf32>,
    return
  }
  func.func @transform_0(%arg0: i32) -> i32 {
    %c0_i32 = arith.constant 0 : i32
    %c0_i32_0 = arith.constant 0 : i32
    return %c0_i32 : i32
  }
  func.func @transform_1(%arg0: i32) -> (i32, i32) {
    %c0_i32 = arith.constant 0 : i32
    %c0_i32_0 = arith.constant 0 : i32
    %c0_i32_1 = arith.constant 0 : i32
    return %c0_i32, %c0_i32_0 : i32, i32
  }
  func.func @transform_2(%arg0: i32) -> (i32, i32, i32) {
    %c0_i32 = arith.constant 0 : i32
    %c0_i32_0 = arith.constant 0 : i32
    %c0_i32_1 = arith.constant 0 : i32
    return %c0_i32, %c0_i32_0, %arg0 : i32, i32, i32
  }
  func.func @transform_3(%arg0: i32) -> (i32, i32) {
    %c0_i32 = arith.constant 0 : i32
    %c0_i32_0 = arith.constant 0 : i32
    return %c0_i32, %arg0 : i32, i32
  }
}

</mosaic_0001>

<bundles_post_ra>
// kernel: tpu_custom_call.1
= control target key start
LH: loop header
LB: loop body
LE: loop exit
PB: predicated region body
PF: predicated region fallthrough
CT: control target
= control target key end

     0   :  { %8 = vsyncpa [#allocation5], 0  ;;  %s5249_s0 = inlined_call_operand.hbm [shape: f32[8], index: 0, kind: input, shape index: {}]   ;;  %s5250_s1 = inlined_call_operand.hbm [shape: f32[16,16], index: 1, kind: input, shape index: {}]   ;;  %s5251_s2 = inlined_call_operand.hbm [shape: f32[8,16,128], index: 2, kind: input, shape index: {}]   ;;  %s5252_s3 = inlined_call_operand.hbm [shape: f32[16,128], index: 3, kind: output, shape index: {}]  }
   0x1   :  { %9 = vsyncpa [#allocation3], 0 }
   0x2   :  { %10 = vsyncpa [#allocation8], 0 }
   0x3   :  { %11 = vsyncpa [#allocation4], 0  ;;  %s4830_s12 = smov [#allocation2]   ;;  %s4831_s15 = smov [#allocation6]  }
   0x4   :  { %19 = dma.hbm_to_smem %s5249_s0, 16, %s4830_s12, [#allocation5]  }
   0x5   :  { %s25_s16 = sshll.u32 %s4831_s15, 4  ;;  %s26_s16 = int_to_ptr.vmem [resolvable:$true] %s25_s16 }
   0x6   :  { %s4770_s17 = scalar_lea.vmem %s26_s16, 256  ;;  %p4775_p1 = scmp.lt.s32.totalorder %s26_s16, %s26_s16 }
   0x7   :  { %p4771_p0 = scmp.ne.s32.totalorder %s26_s16, %s4770_s17  ;;  %p4776_p2 = scmp.lt.s32.totalorder %s4770_s17, %s4770_s17 }
   0x9   :  { %p4777_p3 = por %p4776_p2, %p4775_p1 }
   0xb   :  { %p4778_p4 = pnand %p4777_p3, %p4771_p0 }
   0xd   :  { %4781 = shalt.err (!%p4778_p4)
}
   0xe   :  { %s4832_s18 = smov 128   ;;  %s4833_s19 = smov 8  }
   0xf   :  { %31 = dma.hbm_to_vmem [thread:$0]  %s5250_s1, 256, %s26_s16, [#allocation3], %s4832_s18, %s4832_s18, %s4833_s19  }
  0x10   :  { %s4834_s0 = smov [#allocation7]  }
  0x11   :  { %s37_s22 = sshll.u32 %s4834_s0, 4  ;;  %s38_s22 = int_to_ptr.vmem [resolvable:$true] %s37_s22 }
  0x12   :  { %s4790_s23 = scalar_lea.vmem %s38_s22, 2048  ;;  %p4795_p6 = scmp.lt.s32.totalorder %s38_s22, %s38_s22 }
  0x13   :  { %p4791_p5 = scmp.ne.s32.totalorder %s38_s22, %s4790_s23  ;;  %p4796_p7 = scmp.lt.s32.totalorder %s4790_s23, %s4790_s23 }
  0x15   :  { %p4797_p8 = por %p4796_p7, %p4795_p6 }
  0x17   :  { %p4798_p9 = pnand %p4797_p8, %p4791_p5 }
  0x19   :  { %4801 = shalt.err (!%p4798_p9)
}
  0x1a   :  { %43 = dma.hbm_to_vmem [thread:$0]  %s5251_s2, 2048, %s38_s22, [#allocation8], %s4832_s18, %s4832_s18, %s4833_s19  }
  0x1b   :  { %4822 = dma.done.wait [#allocation5], 16  }
  0x1c   :  { %4823 = vsyncadd [#allocation5], 4294967280 }
  0x1d   :  { %4824 = dma.done.wait [#allocation3], 256  }
  0x1e   :  { %4825 = vsyncadd [#allocation3], 4294967040 }
  0x1f   :  { %4826 = dma.done.wait [#allocation8], 2048  }
  0x20   :  { %4827 = vsyncadd [#allocation8], 4294965248 }
  0x21   :  { %53 = sfence }
  0x22   :  { %v57_v0 = vld [vmem:[#allocation7 + $0x8] sm:$0xff]  ;;  %v56_v1 = vld [vmem:[#allocation7] sm:$0xff]  ;;  %v54_v2 = vld [vmem:[#allocation6] sm:$0xff]  ;;  %vm58_vm0 = vcmask 130048   ;;  %s5190_s1 = sld [smem:[#allocation2]]  ;;  %s4835_s5 = smov [#allocation9]  }
  0x23   :  { %v94_v3 = vand.u32 4294901760, %v57_v0  ;;  %v4871_v4 = vand.u32 4294901760, %v56_v1  ;;  %v60_v5 = vsel %vm58_vm0, %v54_v2, 0  ;;  %v55_v6 = vld [vmem:[#allocation6 + $0x8] sm:$0xff]  ;;  %v576_v21 = vld [vmem:[#allocation7 + $0x10] sm:$0xff]  ;;  %v1094_v36 = vld [vmem:[#allocation7 + $0x28] sm:$0xff] }
  0x24   :  { %v4873_v7 = vand.u32 4294901760, %v60_v5  ;;  %v63_v8 = vsel %vm58_vm0, %v55_v6, 0  ;;  %v577_v16 = vld [vmem:[#allocation7 + $0x18] sm:$0xff]  ;;  %v4901_v28 = vand.u32 4294901760, %v576_v21  ;;  %v1093_v38 = vld [vmem:[#allocation7 + $0x20] sm:$0xff]  ;;  %v4923_v40 = vand.u32 4294901760, %v1094_v36 }
  0x25   :  { %4412 = vmatprep.subr.mxu0 %v94_v3  ;;  %v182_v9 = vsub.f32 %v57_v0, %v94_v3  ;;  %v4875_v10 = vand.u32 4294901760, %v63_v8  ;;  %v189_v11 = vsub.f32 %v56_v1, %v4871_v4  ;;  %v4895_v23 = vand.u32 4294901760, %v577_v16  ;;  %v1611_v48 = vld [vmem:[#allocation7 + $0x38] sm:$0xff]  ;;  %v1610_v50 = vld [vmem:[#allocation7 + $0x30] sm:$0xff]  ;;  %v2128_v60 = vld [vmem:[#allocation7 + $0x48] sm:$0xff]  ;;  %s5193_s2 = sld [smem:[#allocation2 + $0x1]] }
  0x26   :  { %4413 = vmatpush3.msra.mxu0 %v94_v3  ;;  %v4879_v12 = vsub.f32 %v60_v5, %v4873_v7  ;;  %4423 = vmatprep.mubr.f32.mxu1 %v4873_v7  ;;  %v702_v31 = vsub.f32 %v576_v21, %v4901_v28  ;;  %v4928_v41 = vand.u32 4294901760, %v1093_v38  ;;  %v1212_v42 = vsub.f32 %v1094_v36, %v4923_v40  ;;  %v2127_v62 = vld [vmem:[#allocation7 + $0x40] sm:$0xff]  ;;  %s5196_s26 = sld [smem:[#allocation2 + $0x2]]  ;;  %s4199_s6 = sshll.u32 %s4835_s5, 4  ;;  %s4200_s6 = int_to_ptr.vmem [resolvable:$true] %s4199_s6 }
  0x27   :  { %4414 = vmatprep.subr.mxu0 %v4871_v4  ;;  %v183_v13 = vand.u32 4294901760, %v182_v9  ;;  %v4884_v14 = vsub.f32 %v63_v8, %v4875_v10  ;;  %v190_v15 = vand.u32 4294901760, %v189_v11  ;;  %v695_v30 = vsub.f32 %v577_v16, %v4895_v23  ;;  %s5199_s27 = sld [smem:[#allocation2 + $0x3]]  ;;  %s4802_s7 = scalar_lea.vmem %s4200_s6, 256 }
  0x28   :  { %4415 = vmatpush3.msra.mxu0 %v4871_v4  ;;  %v4888_v17 = vand.u32 4294901760, %v4879_v12  ;;  %v703_v33 = vand.u32 4294901760, %v702_v31  ;;  %v1219_v43 = vsub.f32 %v1093_v38, %v4928_v41  ;;  %v1213_v44 = vand.u32 4294901760, %v1212_v42  ;;  %s5203_s28 = sld [smem:[#allocation2 + $0x4]]  ;;  %p4803_p10 = scmp.ne.s32.totalorder %s4200_s6, %s4802_s7 }
  0x29   :  { %v184_v18 = vsub.f32 %v182_v9, %v183_v13  ;;  %v4891_v19 = vand.u32 4294901760, %v4884_v14  ;;  %v191_v20 = vsub.f32 %v189_v11, %v190_v15  ;;  %4426 = vmatprep.subr.mxu0 %v182_v9  ;;  %v696_v32 = vand.u32 4294901760, %v695_v30  ;;  %s5208_s29 = sld [smem:[#allocation2 + $0x5]]  ;;  %p4807_p11 = scmp.lt.s32.totalorder %s4200_s6, %s4200_s6 }
  0x2a   :  { %v135_v22 = vsub.f32 %v4879_v12, %v4888_v17  ;;  %v704_v35 = vsub.f32 %v702_v31, %v703_v33  ;;  %v1220_v45 = vand.u32 4294901760, %v1219_v43  ;;  %v1214_v46 = vsub.f32 %v1212_v42, %v1213_v44  ;;  %s5234_s30 = sld [smem:[#allocation2 + $0x6]]  ;;  %p4808_p12 = scmp.lt.s32.totalorder %s4802_s7, %s4802_s7 }
  0x2b   :  { %v185_v24 = vand.u32 4294901760, %v184_v18  ;;  %v145_v25 = vsub.f32 %v4884_v14, %v4891_v19  ;;  %v192_v26 = vand.u32 4294901760, %v191_v20  ;;  %v697_v34 = vsub.f32 %v695_v30, %v696_v32  ;;  %s5239_s4 = sld [smem:[#allocation2 + $0x7]] }
  0x2c   :  { %v4899_v27 = vand.u32 4294901760, %v135_v22  ;;  %v705_v39 = vand.u32 4294901760, %v704_v35  ;;  %v1221_v47 = vsub.f32 %v1219_v43, %v1220_v45  ;;  %v1215_v49 = vand.u32 4294901760, %v1214_v46  ;;  %p4809_p13 = por %p4808_p12, %p4807_p11 }
  0x2d   :  { %4419 = vmatprep.subr.mxu1 %v185_v24  ;;  %v4903_v29 = vand.u32 4294901760, %v145_v25  ;;  %v698_v37 = vand.u32 4294901760, %v697_v34  ;;  %v4953_v52 = vand.u32 4294901760, %v1611_v48  ;;  %v4958_v53 = vand.u32 4294901760, %v1610_v50 }
  0x2e   :  { %4416 = vmatprep.mubr.f32.mxu0 %v4899_v27  ;;  %4420 = vmatpush3.msra.mxu1 %v185_v24  ;;  %v1222_v51 = vand.u32 4294901760, %v1221_v47  ;;  %v4983_v0 = vand.u32 4294901760, %v2128_v60  ;;  %v4988_v1 = vand.u32 4294901760, %v2127_v62  ;;  %p4810_p0 = pnand %p4809_p13, %p4803_p10 }
  0x2f   :  { %4417 = vmatmul.mubr.f32.vlgmr.msra.gmra.mxu0 %v4903_v29  ;;  %4421 = vmatprep.subr.mxu1 %v192_v26  ;;  %v1729_v54 = vsub.f32 %v1611_v48, %v4953_v52  ;;  %v1736_v55 = vsub.f32 %v1610_v50, %v4958_v53 }
  0x30   :  { %4422 = vmatpush3.msra.mxu1 %v192_v26  ;;  %4427 = vmatpush3.msra.mxu0 %v182_v9  ;;  %v2246_v2 = vsub.f32 %v2128_v60, %v4983_v0  ;;  %v2645_v9 = vld [vmem:[#allocation7 + $0x58] sm:$0xff]  ;;  %v3162_v26 = vld [vmem:[#allocation7 + $0x68] sm:$0xff] }
  0x31   :  { %4424 = vmatmul.mubr.f32.vlgmr.msra.gmra.mxu1 %v4875_v10  ;;  %4428 = vmatprep.subr.mxu0 %v189_v11  ;;  %v1730_v56 = vand.u32 4294901760, %v1729_v54  ;;  %v1737_v57 = vand.u32 4294901760, %v1736_v55  ;;  %v5013_v16 = vand.u32 4294901760, %v2645_v9 }
  0x32   :  { %4433 = vmatprep.subr.mxu1 %v94_v3  ;;  %4429 = vmatpush3.msra.mxu0 %v189_v11 }
  0x33   :  { %4430 = vmatprep.mubr.f32.mxu0 %v4879_v12  ;;  %4434 = vmatpush3.msra.mxu1 %v94_v3  ;;  %v1731_v58 = vsub.f32 %v1729_v54, %v1730_v56  ;;  %v1738_v59 = vsub.f32 %v1736_v55, %v1737_v57  ;;  %v2763_v20 = vsub.f32 %v2645_v9, %v5013_v16 }
  0x34   :  { %4431 = vmatmul.mubr.f32.vlgmr.msra.gmra.mxu0 %v4884_v14  ;;  %4435 = vmatprep.subr.mxu1 %v4871_v4 }
  0x35   :  { %4440 = vmatprep.subr.mxu0 %v183_v13  ;;  %4436 = vmatpush3.msra.mxu1 %v4871_v4  ;;  %v1732_v61 = vand.u32 4294901760, %v1731_v58  ;;  %v1739_v63 = vand.u32 4294901760, %v1738_v59  ;;  %v2764_v22 = vand.u32 4294901760, %v2763_v20 }
  0x36   :  { %4437 = vmatprep.mubr.f32.mxu1 %v4888_v17  ;;  %4441 = vmatpush3.msra.mxu0 %v183_v13  ;;  %v2644_v13 = vld [vmem:[#allocation7 + $0x50] sm:$0xff] }
  0x37   :  { %4438 = vmatmul.mubr.f32.vlgmr.msra.gmra.mxu1 %v4891_v19  ;;  %4442 = vmatprep.subr.mxu0 %v190_v15  ;;  %v5018_v18 = vand.u32 4294901760, %v2644_v13  ;;  %v2765_v24 = vsub.f32 %v2763_v20, %v2764_v22 }
  0x38   :  { %4447 = vmatprep.subr.mxu1 %v94_v3  ;;  %4443 = vmatpush3.msra.mxu0 %v190_v15 }
  0x39   :  { %4444 = vmatprep.mubr.f32.mxu0 %v4873_v7  ;;  %4448 = vmatpush3.msra.mxu1 %v94_v3  ;;  %v2253_v3 = vsub.f32 %v2127_v62, %v4988_v1  ;;  %v2770_v21 = vsub.f32 %v2644_v13, %v5018_v18 }
  0x3a   :  { %4445 = vmatmul.mubr.f32.vlgmr.msra.gmra.mxu0 %v4875_v10  ;;  %4449 = vmatprep.subr.mxu1 %v4871_v4 }
  0x3b   :  { %4454 = vmatprep.subr.mxu0 %v4895_v23  ;;  %4450 = vmatpush3.msra.mxu1 %v4871_v4  ;;  %v2247_v4 = vand.u32 4294901760, %v2246_v2  ;;  %v2254_v5 = vand.u32 4294901760, %v2253_v3 }
  0x3c   :  { %4451 = vmatprep.mubr.f32.mxu1 %v4873_v7  ;;  %4455 = vmatpush3.msra.mxu0 %v4895_v23 }
  0x3d   :  { %4452 = vmatmul.mubr.f32.vlgmr.msra.gmra.mxu1 %v4875_v10  ;;  %4456 = vmatprep.subr.mxu0 %v4901_v28  ;;  %v2248_v6 = vsub.f32 %v2246_v2, %v2247_v4  ;;  %v2255_v8 = vsub.f32 %v2253_v3, %v2254_v5 }
  0x3e   :  { %4461 = vmatprep.subr.mxu1 %v698_v37  ;;  %4457 = vmatpush3.msra.mxu0 %v4901_v28 }
  0x3f   :  { %4458 = vmatprep.mubr.f32.mxu0 %v4899_v27  ;;  %4462 = vmatpush3.msra.mxu1 %v698_v37  ;;  %v2249_v11 = vand.u32 4294901760, %v2248_v6  ;;  %v2256_v15 = vand.u32 4294901760, %v2255_v8 }
  0x40   :  { %4459 = vmatmul.mubr.f32.vlgmr.msra.gmra.mxu0 %v4903_v29  ;;  %4463 = vmatprep.subr.mxu1 %v705_v39 }
  0x41   :  { %4468 = vmatprep.subr.mxu0 %v695_v30  ;;  %4464 = vmatpush3.msra.mxu1 %v705_v39 }
  0x42   :  { %4465 = vmatprep.mubr.f32.mxu1 %v4873_v7  ;;  %4469 = vmatpush3.msra.mxu0 %v695_v30  ;;  %v3161_v30 = vld [vmem:[#allocation7 + $0x60] sm:$0xff] }
  0x43   :  { %4466 = vmatmul.mubr.f32.vlgmr.msra.gmra.mxu1 %v4875_v10  ;;  %4470 = vmatprep.subr.mxu0 %v702_v31 }
  0x44   :  { %4475 = vmatprep.subr.mxu1 %v4895_v23  ;;  %4471 = vmatpush3.msra.mxu0 %v702_v31 }
  0x45   :  { %4472 = vmatprep.mubr.f32.mxu0 %v4879_v12  ;;  %4476 = vmatpush3.msra.mxu1 %v4895_v23 }
  0x46   :  { %4473 = vmatmul.mubr.f32.vlgmr.msra.gmra.mxu0 %v4884_v14  ;;  %4477 = vmatprep.subr.mxu1 %v4901_v28 }
  0x47   :  { %4482 = vmatprep.subr.mxu0 %v696_v32  ;;  %4478 = vmatpush3.msra.mxu1 %v4901_v28 }
  0x48   :  { %4479 = vmatprep.mubr.f32.mxu1 %v4888_v17  ;;  %4483 = vmatpush3.msra.mxu0 %v696_v32  ;;  %v5043_v32 = vand.u32 4294901760, %v3162_v26 }
  0x49   :  { %4480 = vmatmul.mubr.f32.vlgmr.msra.gmra.mxu1 %v4891_v19  ;;  %4484 = vmatprep.subr.mxu0 %v703_v33 }
  0x4a   :  { %4489 = vmatprep.subr.mxu1 %v4895_v23  ;;  %4485 = vmatpush3.msra.mxu0 %v703_v33  ;;  %v5048_v33 = vand.u32 4294901760, %v3161_v30  ;;  %v3280_v34 = vsub.f32 %v3162_v26, %v5043_v32 }
  0x4b   :  { %4486 = vmatprep.mubr.f32.mxu0 %v4873_v7  ;;  %4490 = vmatpush3.msra.mxu1 %v4895_v23  ;;  %v2771_v23 = vand.u32 4294901760, %v2770_v21 }
  0x4c   :  { %4487 = vmatmul.mubr.f32.vlgmr.msra.gmra.mxu0 %v4875_v10  ;;  %4491 = vmatprep.subr.mxu1 %v4901_v28  ;;  %v3287_v35 = vsub.f32 %v3161_v30, %v5048_v33  ;;  %v3281_v36 = vand.u32 4294901760, %v3280_v34 }
  0x4d   :  { %4496 = vmatprep.subr.mxu0 %v4923_v40  ;;  %4492 = vmatpush3.msra.mxu1 %v4901_v28  ;;  %v2772_v25 = vsub.f32 %v2770_v21, %v2771_v23  ;;  %v2766_v28 = vand.u32 4294901760, %v2765_v24 }
  0x4e   :  { %4493 = vmatprep.mubr.f32.mxu1 %v4873_v7  ;;  %4497 = vmatpush3.msra.mxu0 %v4923_v40  ;;  %v3288_v37 = vand.u32 4294901760, %v3287_v35  ;;  %v3282_v38 = vsub.f32 %v3280_v34, %v3281_v36 }
  0x4f   :  { %4494 = vmatmul.mubr.f32.vlgmr.msra.gmra.mxu1 %v4875_v10  ;;  %4498 = vmatprep.subr.mxu0 %v4928_v41  ;;  %v2773_v31 = vand.u32 4294901760, %v2772_v25 }
  0x50   :  { %4503 = vmatprep.subr.mxu1 %v1215_v49  ;;  %4499 = vmatpush3.msra.mxu0 %v4928_v41  ;;  %v3289_v39 = vsub.f32 %v3287_v35, %v3288_v37 }
  0x51   :  { %4500 = vmatprep.mubr.f32.mxu0 %v4899_v27  ;;  %4504 = vmatpush3.msra.mxu1 %v1215_v49 }
  0x52   :  { %4501 = vmatmul.mubr.f32.vlgmr.msra.gmra.mxu0 %v4903_v29  ;;  %4505 = vmatprep.subr.mxu1 %v1222_v51 }
  0x53   :  { %4510 = vmatprep.subr.mxu0 %v1212_v42  ;;  %4506 = vmatpush3.msra.mxu1 %v1222_v51 }
  0x54   :  { %4507 = vmatprep.mubr.f32.mxu1 %v4873_v7  ;;  %4511 = vmatpush3.msra.mxu0 %v1212_v42  ;;  %v3678_v42 = vld [vmem:[#allocation7 + $0x70] sm:$0xff] }
  0x55   :  { %4508 = vmatmul.mubr.f32.vlgmr.msra.gmra.mxu1 %v4875_v10  ;;  %4512 = vmatprep.subr.mxu0 %v1219_v43 }
  0x56   :  { %4517 = vmatprep.subr.mxu1 %v4923_v40  ;;  %4513 = vmatpush3.msra.mxu0 %v1219_v43  ;;  %v3290_v43 = vand.u32 4294901760, %v3289_v39 }
  0x57   :  { %4514 = vmatprep.mubr.f32.mxu0 %v4879_v12  ;;  %4518 = vmatpush3.msra.mxu1 %v4923_v40 }
  0x58   :  { %4515 = vmatmul.mubr.f32.vlgmr.msra.gmra.mxu0 %v4884_v14  ;;  %4519 = vmatprep.subr.mxu1 %v4928_v41 }
  0x59   :  { %4524 = vmatprep.subr.mxu0 %v1213_v44  ;;  %4520 = vmatpush3.msra.mxu1 %v4928_v41 }
  0x5a   :  { %4521 = vmatprep.mubr.f32.mxu1 %v4888_v17  ;;  %4525 = vmatpush3.msra.mxu0 %v1213_v44 }
  0x5b   :  { %4522 = vmatmul.mubr.f32.vlgmr.msra.gmra.mxu1 %v4891_v19  ;;  %4526 = vmatprep.subr.mxu0 %v1220_v45 }
  0x5c   :  { %4531 = vmatprep.subr.mxu1 %v4923_v40  ;;  %4527 = vmatpush3.msra.mxu0 %v1220_v45  ;;  %v5078_v45 = vand.u32 4294901760, %v3678_v42 }
  0x5d   :  { %4528 = vmatprep.mubr.f32.mxu0 %v4873_v7  ;;  %4532 = vmatpush3.msra.mxu1 %v4923_v40  ;;  %v3679_v40 = vld [vmem:[#allocation7 + $0x78] sm:$0xff] }
  0x5e   :  { %4529 = vmatmul.mubr.f32.vlgmr.msra.gmra.mxu0 %v4875_v10  ;;  %4533 = vmatprep.subr.mxu1 %v4928_v41  ;;  %v5073_v44 = vand.u32 4294901760, %v3679_v40  ;;  %v3804_v47 = vsub.f32 %v3678_v42, %v5078_v45 }
  0x5f   :  { %4538 = vmatprep.subr.mxu0 %v4953_v52  ;;  %4534 = vmatpush3.msra.mxu1 %v4928_v41  ;;  %v3283_v41 = vand.u32 4294901760, %v3282_v38 }
  0x60   :  { %4535 = vmatprep.mubr.f32.mxu1 %v4873_v7  ;;  %4539 = vmatpush3.msra.mxu0 %v4953_v52  ;;  %v3797_v46 = vsub.f32 %v3679_v40, %v5073_v44  ;;  %v3805_v49 = vand.u32 4294901760, %v3804_v47 }
  0x61   :  { %4536 = vmatmul.mubr.f32.vlgmr.msra.gmra.mxu1 %v4875_v10  ;;  %4540 = vmatprep.subr.mxu0 %v4958_v53 }
  0x62   :  { %4545 = vmatprep.subr.mxu1 %v1732_v61  ;;  %4541 = vmatpush3.msra.mxu0 %v4958_v53  ;;  %v3798_v48 = vand.u32 4294901760, %v3797_v46  ;;  %v3806_v51 = vsub.f32 %v3804_v47, %v3805_v49 }
  0x63   :  { %4542 = vmatprep.mubr.f32.mxu0 %v4899_v27  ;;  %4546 = vmatpush3.msra.mxu1 %v1732_v61 }
  0x64   :  { %4543 = vmatmul.mubr.f32.vlgmr.msra.gmra.mxu0 %v4903_v29  ;;  %4547 = vmatprep.subr.mxu1 %v1739_v63  ;;  %v3799_v50 = vsub.f32 %v3797_v46, %v3798_v48 }
  0x65   :  { %4552 = vmatprep.subr.mxu0 %v1729_v54  ;;  %4548 = vmatpush3.msra.mxu1 %v1739_v63 }
  0x66   :  { %4549 = vmatprep.mubr.f32.mxu1 %v4873_v7  ;;  %4553 = vmatpush3.msra.mxu0 %v1729_v54 }
  0x67   :  { %4550 = vmatmul.mubr.f32.vlgmr.msra.gmra.mxu1 %v4875_v10  ;;  %4554 = vmatprep.subr.mxu0 %v1736_v55 }
  0x68   :  { %4559 = vmatprep.subr.mxu1 %v4953_v52  ;;  %4555 = vmatpush3.msra.mxu0 %v1736_v55 }
  0x69   :  { %4556 = vmatprep.mubr.f32.mxu0 %v4879_v12  ;;  %4560 = vmatpush3.msra.mxu1 %v4953_v52 }
  0x6a   :  { %4557 = vmatmul.mubr.f32.vlgmr.msra.gmra.mxu0 %v4884_v14  ;;  %4561 = vmatprep.subr.mxu1 %v4958_v53 }
  0x6b   :  { %4566 = vmatprep.subr.mxu0 %v1730_v56  ;;  %4562 = vmatpush3.msra.mxu1 %v4958_v53 }
  0x6c   :  { %4563 = vmatprep.mubr.f32.mxu1 %v4888_v17  ;;  %4567 = vmatpush3.msra.mxu0 %v1730_v56 }
  0x6d   :  { %4564 = vmatmul.mubr.f32.vlgmr.msra.gmra.mxu1 %v4891_v19  ;;  %4568 = vmatprep.subr.mxu0 %v1737_v57 }
  0x6e   :  { %4573 = vmatprep.subr.mxu1 %v4953_v52  ;;  %4569 = vmatpush3.msra.mxu0 %v1737_v57 }
  0x6f   :  { %4570 = vmatprep.mubr.f32.mxu0 %v4873_v7  ;;  %4574 = vmatpush3.msra.mxu1 %v4953_v52  ;;  %v3800_v52 = vand.u32 4294901760, %v3799_v50 }
  0x70   :  { %4571 = vmatmul.mubr.f32.vlgmr.msra.gmra.mxu0 %v4875_v10  ;;  %4575 = vmatprep.subr.mxu1 %v4958_v53 }
  0x71   :  { %4580 = vmatprep.subr.mxu0 %v4983_v0  ;;  %4576 = vmatpush3.msra.mxu1 %v4958_v53  ;;  %v3807_v53 = vand.u32 4294901760, %v3806_v51 }
  0x72   :  { %4577 = vmatprep.mubr.f32.mxu1 %v4873_v7  ;;  %4581 = vmatpush3.msra.mxu0 %v4983_v0 }
  0x73   :  { %4578 = vmatmul.mubr.f32.vlgmr.msra.gmra.mxu1 %v4875_v10  ;;  %4582 = vmatprep.subr.mxu0 %v4988_v1 }
  0x74   :  { %4587 = vmatprep.subr.mxu1 %v2249_v11  ;;  %4583 = vmatpush3.msra.mxu0 %v4988_v1 }
  0x75   :  { %4584 = vmatprep.mubr.f32.mxu0 %v4899_v27  ;;  %4588 = vmatpush3.msra.mxu1 %v2249_v11 }
  0x76   :  { %4585 = vmatmul.mubr.f32.vlgmr.msra.gmra.mxu0 %v4903_v29  ;;  %4589 = vmatprep.subr.mxu1 %v2256_v15 }
  0x77   :  { %4594 = vmatprep.subr.mxu0 %v2246_v2  ;;  %4590 = vmatpush3.msra.mxu1 %v2256_v15 }
  0x78   :  { %4591 = vmatprep.mubr.f32.mxu1 %v4873_v7  ;;  %4595 = vmatpush3.msra.mxu0 %v2246_v2 }
  0x79   :  { %4592 = vmatmul.mubr.f32.vlgmr.msra.gmra.mxu1 %v4875_v10  ;;  %4596 = vmatprep.subr.mxu0 %v2253_v3 }
  0x7a   :  { %4601 = vmatprep.subr.mxu1 %v4983_v0  ;;  %4597 = vmatpush3.msra.mxu0 %v2253_v3 }
  0x7b   :  { %4598 = vmatprep.mubr.f32.mxu0 %v4879_v12  ;;  %4602 = vmatpush3.msra.mxu1 %v4983_v0 }
  0x7c   :  { %4599 = vmatmul.mubr.f32.vlgmr.msra.gmra.mxu0 %v4884_v14  ;;  %4603 = vmatprep.subr.mxu1 %v4988_v1 }
  0x7d   :  { %4608 = vmatprep.subr.mxu0 %v2247_v4  ;;  %4604 = vmatpush3.msra.mxu1 %v4988_v1 }
  0x7e   :  { %4605 = vmatprep.mubr.f32.mxu1 %v4888_v17  ;;  %4609 = vmatpush3.msra.mxu0 %v2247_v4 }
  0x7f   :  { %4606 = vmatmul.mubr.f32.vlgmr.msra.gmra.mxu1 %v4891_v19  ;;  %4610 = vmatprep.subr.mxu0 %v2254_v5 }
  0x80   :  { %4615 = vmatprep.subr.mxu1 %v4983_v0  ;;  %4611 = vmatpush3.msra.mxu0 %v2254_v5 }
  0x81   :  { %4612 = vmatprep.mubr.f32.mxu0 %v4873_v7  ;;  %4616 = vmatpush3.msra.mxu1 %v4983_v0 }
  0x82   :  { %4613 = vmatmul.mubr.f32.vlgmr.msra.gmra.mxu0 %v4875_v10  ;;  %4617 = vmatprep.subr.mxu1 %v4988_v1 }
  0x83   :  { %4622 = vmatprep.subr.mxu0 %v5013_v16  ;;  %4618 = vmatpush3.msra.mxu1 %v4988_v1 }
  0x84   :  { %4619 = vmatprep.mubr.f32.mxu1 %v4873_v7  ;;  %4623 = vmatpush3.msra.mxu0 %v5013_v16 }
  0x85   :  { %4620 = vmatmul.mubr.f32.vlgmr.msra.gmra.mxu1 %v4875_v10  ;;  %4624 = vmatprep.subr.mxu0 %v5018_v18 }
  0x86   :  { %4629 = vmatprep.subr.mxu1 %v2766_v28  ;;  %4625 = vmatpush3.msra.mxu0 %v5018_v18 }
  0x87   :  { %4626 = vmatprep.mubr.f32.mxu0 %v4899_v27  ;;  %4630 = vmatpush3.msra.mxu1 %v2766_v28 }
  0x88   :  { %4627 = vmatmul.mubr.f32.vlgmr.msra.gmra.mxu0 %v4903_v29  ;;  %4631 = vmatprep.subr.mxu1 %v2773_v31 }
  0x89   :  { %4636 = vmatprep.subr.mxu0 %v2763_v20  ;;  %4632 = vmatpush3.msra.mxu1 %v2773_v31 }
  0x8a   :  { %4633 = vmatprep.mubr.f32.mxu1 %v4873_v7  ;;  %4637 = vmatpush3.msra.mxu0 %v2763_v20 }
  0x8b   :  { %4634 = vmatmul.mubr.f32.vlgmr.msra.gmra.mxu1 %v4875_v10  ;;  %4638 = vmatprep.subr.mxu0 %v2770_v21 }
  0x8c   :  { %4643 = vmatprep.subr.mxu1 %v5013_v16  ;;  %4639 = vmatpush3.msra.mxu0 %v2770_v21 }
  0x8d   :  { %4640 = vmatprep.mubr.f32.mxu0 %v4879_v12  ;;  %4644 = vmatpush3.msra.mxu1 %v5013_v16 }
  0x8e   :  { %4641 = vmatmul.mubr.f32.vlgmr.msra.gmra.mxu0 %v4884_v14  ;;  %4645 = vmatprep.subr.mxu1 %v5018_v18 }
  0x8f   :  { %4650 = vmatprep.subr.mxu0 %v2764_v22  ;;  %4646 = vmatpush3.msra.mxu1 %v5018_v18 }
  0x90   :  { %4647 = vmatprep.mubr.f32.mxu1 %v4888_v17  ;;  %4651 = vmatpush3.msra.mxu0 %v2764_v22 }
  0x91   :  { %4648 = vmatmul.mubr.f32.vlgmr.msra.gmra.mxu1 %v4891_v19  ;;  %4652 = vmatprep.subr.mxu0 %v2771_v23 }
  0x92   :  { %4657 = vmatprep.subr.mxu1 %v5013_v16  ;;  %4653 = vmatpush3.msra.mxu0 %v2771_v23 }
  0x93   :  { %4654 = vmatprep.mubr.f32.mxu0 %v4873_v7  ;;  %4658 = vmatpush3.msra.mxu1 %v5013_v16 }
  0x94   :  { %4655 = vmatmul.mubr.f32.vlgmr.msra.gmra.mxu0 %v4875_v10  ;;  %4659 = vmatprep.subr.mxu1 %v5018_v18 }
  0x95   :  { %4664 = vmatprep.subr.mxu0 %v5043_v32  ;;  %4660 = vmatpush3.msra.mxu1 %v5018_v18 }
  0x96   :  { %4661 = vmatprep.mubr.f32.mxu1 %v4873_v7  ;;  %4665 = vmatpush3.msra.mxu0 %v5043_v32 }
  0x97   :  { %4662 = vmatmul.mubr.f32.vlgmr.msra.gmra.mxu1 %v4875_v10  ;;  %4666 = vmatprep.subr.mxu0 %v5048_v33 }
  0x98   :  { %4671 = vmatprep.subr.mxu1 %v3283_v41  ;;  %4667 = vmatpush3.msra.mxu0 %v5048_v33 }
  0x99   :  { %4668 = vmatprep.mubr.f32.mxu0 %v4899_v27  ;;  %4672 = vmatpush3.msra.mxu1 %v3283_v41 }
  0x9a   :  { %4669 = vmatmul.mubr.f32.vlgmr.msra.gmra.mxu0 %v4903_v29  ;;  %4673 = vmatprep.subr.mxu1 %v3290_v43 }
  0x9b   :  { %4678 = vmatprep.subr.mxu0 %v3280_v34  ;;  %4674 = vmatpush3.msra.mxu1 %v3290_v43 }
  0x9c   :  { %4675 = vmatprep.mubr.f32.mxu1 %v4873_v7  ;;  %4679 = vmatpush3.msra.mxu0 %v3280_v34 }
  0x9d   :  { %4676 = vmatmul.mubr.f32.vlgmr.msra.gmra.mxu1 %v4875_v10  ;;  %4680 = vmatprep.subr.mxu0 %v3287_v35 }
  0x9e   :  { %4685 = vmatprep.subr.mxu1 %v5043_v32  ;;  %4681 = vmatpush3.msra.mxu0 %v3287_v35 }
  0x9f   :  { %4682 = vmatprep.mubr.f32.mxu0 %v4879_v12  ;;  %4686 = vmatpush3.msra.mxu1 %v5043_v32 }
  0xa0   :  { %4683 = vmatmul.mubr.f32.vlgmr.msra.gmra.mxu0 %v4884_v14  ;;  %4687 = vmatprep.subr.mxu1 %v5048_v33 }
  0xa1   :  { %4692 = vmatprep.subr.mxu0 %v3281_v36  ;;  %4688 = vmatpush3.msra.mxu1 %v5048_v33 }
  0xa2   :  { %4689 = vmatprep.mubr.f32.mxu1 %v4888_v17  ;;  %4693 = vmatpush3.msra.mxu0 %v3281_v36 }
  0xa3   :  { %4690 = vmatmul.mubr.f32.vlgmr.msra.gmra.mxu1 %v4891_v19  ;;  %4694 = vmatprep.subr.mxu0 %v3288_v37 }
  0xa4   :  { %4699 = vmatprep.subr.mxu1 %v5043_v32  ;;  %4695 = vmatpush3.msra.mxu0 %v3288_v37 }
  0xa5   :  { %4696 = vmatprep.mubr.f32.mxu0 %v4873_v7  ;;  %4700 = vmatpush3.msra.mxu1 %v5043_v32 }
  0xa6   :  { %4697 = vmatmul.mubr.f32.vlgmr.msra.gmra.mxu0 %v4875_v10  ;;  %4701 = vmatprep.subr.mxu1 %v5048_v33 }
  0xa7   :  { %4706 = vmatprep.subr.mxu0 %v5073_v44  ;;  %4702 = vmatpush3.msra.mxu1 %v5048_v33 }
  0xa8   :  { %4703 = vmatprep.mubr.f32.mxu1 %v4873_v7  ;;  %4707 = vmatpush3.msra.mxu0 %v5073_v44 }
  0xa9   :  { %4704 = vmatmul.mubr.f32.vlgmr.msra.gmra.mxu1 %v4875_v10  ;;  %4708 = vmatprep.subr.mxu0 %v5078_v45 }
  0xaa   :  { %4713 = vmatprep.subr.mxu1 %v3800_v52  ;;  %4709 = vmatpush3.msra.mxu0 %v5078_v45 }
  0xab   :  { %4710 = vmatprep.mubr.f32.mxu0 %v4899_v27  ;;  %4714 = vmatpush3.msra.mxu1 %v3800_v52 }
  0xac   :  { %4711 = vmatmul.mubr.f32.vlgmr.msra.gmra.mxu0 %v4903_v29  ;;  %4715 = vmatprep.subr.mxu1 %v3807_v53 }
  0xad   :  { %4720 = vmatprep.subr.mxu0 %v3797_v46  ;;  %4716 = vmatpush3.msra.mxu1 %v3807_v53 }
  0xae   :  { %4717 = vmatprep.mubr.f32.mxu1 %v4873_v7  ;;  %4721 = vmatpush3.msra.mxu0 %v3797_v46 }
  0xaf   :  { %4718 = vmatmul.mubr.f32.vlgmr.msra.gmra.mxu1 %v4875_v10  ;;  %4722 = vmatprep.subr.mxu0 %v3804_v47 }
  0xb0   :  { %4727 = vmatprep.subr.mxu1 %v5073_v44  ;;  %4723 = vmatpush3.msra.mxu0 %v3804_v47 }
  0xb1   :  { %4724 = vmatprep.mubr.f32.mxu0 %v4879_v12  ;;  %4728 = vmatpush3.msra.mxu1 %v5073_v44 }
  0xb2   :  { %4725 = vmatmul.mubr.f32.vlgmr.msra.gmra.mxu0 %v4884_v14  ;;  %4729 = vmatprep.subr.mxu1 %v5078_v45 }
  0xb3   :  { %4734 = vmatprep.subr.mxu0 %v3798_v48  ;;  %4730 = vmatpush3.msra.mxu1 %v5078_v45 }
  0xb4   :  { %4731 = vmatprep.mubr.f32.mxu1 %v4888_v17  ;;  %4735 = vmatpush3.msra.mxu0 %v3798_v48 }
  0xb5   :  { %4732 = vmatmul.mubr.f32.vlgmr.msra.gmra.mxu1 %v4891_v19  ;;  %4736 = vmatprep.subr.mxu0 %v3805_v49 }
  0xb6   :  { %4741 = vmatprep.subr.mxu1 %v5073_v44  ;;  %4737 = vmatpush3.msra.mxu0 %v3805_v49 }
  0xb7   :  { %4738 = vmatprep.mubr.f32.mxu0 %v4873_v7  ;;  %4742 = vmatpush3.msra.mxu1 %v5073_v44 }
  0xb8   :  { %4739 = vmatmul.mubr.f32.vlgmr.msra.gmra.mxu0 %v4875_v10  ;;  %4743 = vmatprep.subr.mxu1 %v5078_v45 }
  0xb9   :  { %4744 = vmatpush3.msra.mxu1 %v5078_v45  ;;  %4745 = vmatprep.mubr.f32.mxu1 %v4873_v7 }
  0xba   :  { %4746 = vmatmul.mubr.f32.vlgmr.msra.gmra.mxu1 %v4875_v10 }
  0xef   :  { %v4418_v12 = vpop.f32.mrf.mxu0 }
  0xf1   :  { %v138_v14 = vpop.f32.mrf.mxu0  ;;  %v4425_v17 = vpop.f32.mrf.mxu1 }
  0xf2   :  { %v236_v19 = vadd.f32 %v4425_v17, %v4418_v12 }
  0xf3   :  { %v229_v27 = vpop.f32.mrf.mxu1 }
  0xf4   :  { %v230_v29 = vadd.f32 %v229_v27, %v138_v14  ;;  %v4432_v54 = vpop.f32.mrf.mxu0 }
  0xf5   :  { %v319_v55 = vadd.f32 %v4432_v54, %v236_v19 }
  0xf6   :  { %v311_v56 = vpop.f32.mrf.mxu0 }
  0xf7   :  { %v312_v57 = vadd.f32 %v311_v56, %v230_v29  ;;  %v4439_v58 = vpop.f32.mrf.mxu1 }
  0xf8   :  { %v402_v59 = vadd.f32 %v4439_v58, %v319_v55 }
  0xf9   :  { %v393_v60 = vpop.f32.mrf.mxu1 }
  0xfa   :  { %v394_v61 = vadd.f32 %v393_v60, %v312_v57  ;;  %v4446_v62 = vpop.f32.mrf.mxu0 }
  0xfb   :  { %v485_v63 = vadd.f32 %v4446_v62, %v402_v59 }
  0xfc   :  { %v478_v0 = vpop.f32.mrf.mxu0 }
  0xfd   :  { %v479_v7 = vadd.f32 %v478_v0, %v394_v61  ;;  %v4453_v1 = vpop.f32.mrf.mxu1 }
  0xfe   :  { %v5126_v10 = vadd.f32 %v4453_v1, %v485_v63 }
  0xff   :  { %v557_v2 = vpop.f32.mrf.mxu1 }
 0x100   :  { %5253 = vst [vmem:[#allocation14_spill] sm:$0xff] %v5126_v10  ;;  %v5128_v3 = vadd.f32 %v557_v2, %v479_v7  ;;  %v4460_v4 = vpop.f32.mrf.mxu0 }
 0x102   :  { %5254 = vst [vmem:[#allocation15_spill] sm:$0xff] %v5128_v3  ;;  %v651_v5 = vpop.f32.mrf.mxu0 }
 0x103   :  { %v4467_v6 = vpop.f32.mrf.mxu1 }
 0x104   :  { %v749_v0 = vadd.f32 %v4467_v6, %v4460_v4 }
 0x105   :  { %v742_v8 = vpop.f32.mrf.mxu1 }
 0x106   :  { %v4474_v9 = vpop.f32.mrf.mxu0  ;;  %v743_v1 = vadd.f32 %v742_v8, %v651_v5 }
 0x108   :  { %v5130_v11 = vpop.f32.mrf.mxu0 }
 0x109   :  { %v5132_v13 = vpop.f32.mrf.mxu1 }
 0x10b   :  { %v5134_v15 = vpop.f32.mrf.mxu1 }
 0x10c   :  { %v5136_v16 = vpop.f32.mrf.mxu0 }
 0x10e   :  { %v5138_v18 = vpop.f32.mrf.mxu0 }
 0x10f   :  { %v5140_v20 = vpop.f32.mrf.mxu1 }
 0x111   :  { %v5142_v21 = vpop.f32.mrf.mxu1 }
 0x112   :  { %v4502_v22 = vpop.f32.mrf.mxu0 }
 0x114   :  { %v1168_v23 = vpop.f32.mrf.mxu0 }
 0x115   :  { %v4509_v24 = vpop.f32.mrf.mxu1 }
 0x117   :  { %v1259_v25 = vpop.f32.mrf.mxu1 }
 0x118   :  { %v4516_v26 = vpop.f32.mrf.mxu0 }
 0x11a   :  { %v1341_v28 = vpop.f32.mrf.mxu0 }
 0x11b   :  { %v5144_v30 = vpop.f32.mrf.mxu1 }
 0x11d   :  { %v5146_v31 = vpop.f32.mrf.mxu1 }
 0x11e   :  { %v5148_v32 = vpop.f32.mrf.mxu0 }
 0x120   :  { %v5150_v33 = vpop.f32.mrf.mxu0 }
 0x121   :  { %v5152_v34 = vpop.f32.mrf.mxu1 }
 0x123   :  { %v5154_v35 = vpop.f32.mrf.mxu1 }
 0x124   :  { %5255 = vst [vmem:[#allocation16_spill] sm:$0xff] %v5154_v35  ;;  %v4544_v36 = vpop.f32.mrf.mxu0 }
 0x126   :  { %v1685_v37 = vpop.f32.mrf.mxu0 }
 0x127   :  { %v4551_v38 = vpop.f32.mrf.mxu1 }
 0x128   :  { %v1783_v10 = vadd.f32 %v4551_v38, %v4544_v36 }
 0x129   :  { %v1776_v39 = vpop.f32.mrf.mxu1 }
 0x12a   :  { %v4558_v40 = vpop.f32.mrf.mxu0 }
 0x12b   :  { %v1866_v6 = vadd.f32 %v4558_v40, %v1783_v10 }
 0x12c   :  { %v1858_v41 = vpop.f32.mrf.mxu0 }
 0x12d   :  { %v5156_v42 = vpop.f32.mrf.mxu1 }
 0x12f   :  { %v5158_v43 = vpop.f32.mrf.mxu1 }
 0x130   :  { %v5160_v44 = vpop.f32.mrf.mxu0 }
 0x132   :  { %v5162_v45 = vpop.f32.mrf.mxu0 }
 0x133   :  { %v5164_v46 = vpop.f32.mrf.mxu1 }
 0x134   :  { %5256 = vst [vmem:[#allocation17_spill] sm:$0xff] %v5164_v46  ;;  %v825_v46 = vadd.f32 %v5130_v11, %v743_v1 }
 0x135   :  { %v5166_v47 = vpop.f32.mrf.mxu1 }
 0x136   :  { %5257 = vst [vmem:[#allocation18_spill] sm:$0xff] %v5166_v47  ;;  %v4586_v48 = vpop.f32.mrf.mxu0  ;;  %v1260_v47 = vadd.f32 %v1259_v25, %v1168_v23 }
 0x138   :  { %v2202_v49 = vpop.f32.mrf.mxu0  ;;  %v1342_v5 = vadd.f32 %v1341_v28, %v1260_v47 }
 0x139   :  { %v4593_v50 = vpop.f32.mrf.mxu1 }
 0x13b   :  { %v2293_v51 = vpop.f32.mrf.mxu1 }
 0x13c   :  { %v4600_v52 = vpop.f32.mrf.mxu0  ;;  %v2294_v8 = vadd.f32 %v2293_v51, %v2202_v49  ;;  %v1083_v51 = vstv %s5193_s2 }
 0x13e   :  { %v2375_v53 = vpop.f32.mrf.mxu0 }
 0x13f   :  { %v4607_v12 = vpop.f32.mrf.mxu1  ;;  %v2376_v38 = vadd.f32 %v2375_v53, %v2294_v8  ;;  %v5272_v8 = vld [vmem:[#allocation18_spill] sm:$0xff] }
 0x141   :  { %v5168_v14 = vpop.f32.mrf.mxu1 }
 0x142   :  { %v5170_v17 = vpop.f32.mrf.mxu0 }
 0x143   :  { %5258 = vst [vmem:[#allocation19_spill] sm:$0xff] %v5170_v17  ;;  %v1777_v17 = vadd.f32 %v1776_v39, %v1685_v37  ;;  %v1424_v37 = vadd.f32 %v5146_v31, %v1342_v5 }
 0x144   :  { %v5172_v19 = vpop.f32.mrf.mxu0 }
 0x145   :  { %5259 = vst [vmem:[#allocation20_spill] sm:$0xff] %v5172_v19  ;;  %v5174_v27 = vpop.f32.mrf.mxu1 }
 0x146   :  { %5260 = vst [vmem:[#allocation21_spill] sm:$0xff] %v5174_v27  ;;  %v832_v27 = vadd.f32 %v4474_v9, %v749_v0  ;;  %v907_v9 = vadd.f32 %v5134_v15, %v825_v46  ;;  %v1949_v15 = vadd.f32 %v5156_v42, %v1866_v6 }
 0x147   :  { %v5176_v29 = vpop.f32.mrf.mxu1 }
 0x148   :  { %5261 = vst [vmem:[#allocation22_spill] sm:$0xff] %v5176_v29  ;;  %v4628_v54 = vpop.f32.mrf.mxu0  ;;  %v1266_v29 = vadd.f32 %v4509_v24, %v4502_v22  ;;  %v1859_v24 = vadd.f32 %v1858_v41, %v1777_v17  ;;  %v2032_v49 = vadd.f32 %v5160_v44, %v1949_v15  ;;  %v1600_v17 = vstv %s5196_s26 }
 0x14a   :  { %v2719_v55 = vpop.f32.mrf.mxu0  ;;  %v1941_v46 = vadd.f32 %v5158_v43, %v1859_v24 }
 0x14b   :  { %v4635_v56 = vpop.f32.mrf.mxu1 }
 0x14c   :  { %v2817_v23 = vadd.f32 %v4635_v56, %v4628_v54  ;;  %v2117_v54 = vstv %s5199_s27 }
 0x14d   :  { %v2810_v57 = vpop.f32.mrf.mxu1 }
 0x14e   :  { %v4642_v58 = vpop.f32.mrf.mxu0  ;;  %v2811_v28 = vadd.f32 %v2810_v57, %v2719_v55  ;;  %v5267_v57 = vld [vmem:[#allocation16_spill] sm:$0xff] }
 0x14f   :  { %v2900_v39 = vadd.f32 %v4642_v58, %v2817_v23  ;;  %v5268_v58 = vld [vmem:[#allocation17_spill] sm:$0xff] }
 0x150   :  { %v2892_v59 = vpop.f32.mrf.mxu0 }
 0x151   :  { %v4649_v60 = vpop.f32.mrf.mxu1  ;;  %v2893_v42 = vadd.f32 %v2892_v59, %v2811_v28  ;;  %v2111_v59 = vadd.f32 %v5268_v58, %v2032_v49  ;;  %v3668_v58 = vstv %s5234_s30 }
 0x153   :  { %v5178_v61 = vpop.f32.mrf.mxu1 }
 0x154   :  { %5262 = vst [vmem:[#allocation23_spill] sm:$0xff] %v5178_v61  ;;  %v5180_v62 = vpop.f32.mrf.mxu0  ;;  %v1349_v61 = vadd.f32 %v4516_v26, %v1266_v29 }
 0x155   :  { %5263 = vst [vmem:[#allocation24_spill] sm:$0xff] %v5180_v62  ;;  %v2300_v62 = vadd.f32 %v4593_v50, %v4586_v48  ;;  %v570_v48 = vstv %s5190_s1  ;;  %v2458_v50 = vadd.f32 %v5168_v14, %v2376_v38  ;;  %v2116_v38 = vmax.f32 %v2111_v59, 0.0 }
 0x156   :  { %v5182_v63 = vpop.f32.mrf.mxu0  ;;  %v1432_v11 = vadd.f32 %v5144_v30, %v1349_v61  ;;  %v992_v30 = vadd.f32 %v5138_v18, %v907_v9  ;;  %v1509_v18 = vadd.f32 %v5150_v33, %v1424_v37  ;;  %v5273_v9 = vld [vmem:[#allocation21_spill] sm:$0xff] }
 0x157   :  { %5264 = vst [vmem:[#allocation25_spill] sm:$0xff] %v5182_v63  ;;  %v5184_v7 = vpop.f32.mrf.mxu1  ;;  %v915_v63 = vadd.f32 %v5132_v13, %v832_v27  ;;  %v2383_v25 = vadd.f32 %v4600_v52, %v2300_v62  ;;  %v2983_v52 = vadd.f32 %v4649_v60, %v2900_v39  ;;  %v5265_v27 = vld [vmem:[#allocation19_spill] sm:$0xff]  ;;  %v5269_v60 = vld [vmem:[#allocation20_spill] sm:$0xff]  ;;  %v2634_v62 = vstv %s5203_s28 }
 0x158   :  { %v1071_v43 = vadd.f32 %v5142_v21, %v992_v30  ;;  %v1588_v21 = vadd.f32 %v5267_v57, %v1509_v18  ;;  %v2543_v61 = vadd.f32 %v5269_v60, %v2458_v50  ;;  %v5276_v30 = vld [vmem:[#allocation22_spill] sm:$0xff] }
 0x159   :  { %v5186_v2 = vpop.f32.mrf.mxu1  ;;  %v998_v13 = vadd.f32 %v5136_v16, %v915_v63  ;;  %v1515_v16 = vadd.f32 %v5148_v32, %v1432_v11  ;;  %v5270_v63 = vld [vmem:[#allocation14_spill] sm:$0xff]  ;;  %v3151_v11 = vstv %s5208_s29 }
 0x15a   :  { %v4670_v3 = vpop.f32.mrf.mxu0  ;;  %v569_v0 = vmax.f32 %v5270_v63, 0.0  ;;  %v1598_v15 = vmax.f32 %v1588_v21, 0.0  ;;  %v2622_v39 = vadd.f32 %v5276_v30, %v2543_v61 }
 0x15b   :  { %v5266_v44 = vld [vmem:[#allocation23_spill] sm:$0xff] }
 0x15c   :  { %v3236_v19 = vpop.f32.mrf.mxu0  ;;  %v2975_v14 = vadd.f32 %v5266_v44, %v2893_v42  ;;  %v5271_v1 = vld [vmem:[#allocation24_spill] sm:$0xff] }
 0x15d   :  { %v4677_v35 = vpop.f32.mrf.mxu1 }
 0x15e   :  { %v3334_v10 = vadd.f32 %v4677_v35, %v4670_v3  ;;  %v2466_v3 = vadd.f32 %v4607_v12, %v2383_v25  ;;  %v1077_v35 = vadd.f32 %v5140_v20, %v998_v13  ;;  %v1594_v20 = vadd.f32 %v5152_v34, %v1515_v16  ;;  %v5274_v25 = vld [vmem:[#allocation15_spill] sm:$0xff]  ;;  %v5275_v28 = vld [vmem:[#allocation25_spill] sm:$0xff] }
 0x15f   :  { %v3327_v4 = vpop.f32.mrf.mxu1 }
 0x160   :  { %v4684_v22 = vpop.f32.mrf.mxu0  ;;  %v3328_v40 = vadd.f32 %v3327_v4, %v3236_v19  ;;  %v2026_v19 = vadd.f32 %v5162_v45, %v1941_v46  ;;  %v2549_v29 = vadd.f32 %v5265_v27, %v2466_v3  ;;  %v1082_v33 = vmax.f32 %v1077_v35, 0.0 }
 0x161   :  { %v3417_v47 = vadd.f32 %v4684_v22, %v3334_v10  ;;  %v1081_v45 = vmax.f32 %v1071_v43, 0.0  ;;  %v3066_v4 = vadd.f32 %v5271_v1, %v2983_v52  ;;  %v1599_v6 = vmax.f32 %v1594_v20, 0.0 }
 0x162   :  { %v3409_v26 = vpop.f32.mrf.mxu0  ;;  %v2105_v22 = vadd.f32 %v5272_v8, %v2026_v19  ;;  %v2628_v23 = vadd.f32 %v5273_v9, %v2549_v29  ;;  %v1085_v13 = vmul.f32 %v1083_v51, %v1082_v33  ;;  %v3060_v10 = vadd.f32 %v5275_v28, %v2975_v14 }
 0x163   :  { %v4691_v36 = vpop.f32.mrf.mxu1  ;;  %v3410_v53 = vadd.f32 %v3409_v26, %v3328_v40  ;;  %v568_v26 = vmax.f32 %v5274_v25, 0.0  ;;  %v1084_v16 = vmul.f32 %v1083_v51, %v1081_v45  ;;  %v3145_v46 = vadd.f32 %v5184_v7, %v3066_v4 }
 0x164   :  { %v3500_v55 = vadd.f32 %v4691_v36, %v3417_v47  ;;  %v1602_v42 = vmul.f32 %v1600_v17, %v1599_v6  ;;  %v2115_v47 = vmax.f32 %v2105_v22, 0.0  ;;  %v2633_v18 = vmax.f32 %v2628_v23, 0.0 }
 0x165   :  { %v3491_v41 = vpop.f32.mrf.mxu1  ;;  %v3139_v43 = vadd.f32 %v5186_v2, %v3060_v10  ;;  %v1601_v19 = vmul.f32 %v1600_v17, %v1598_v15  ;;  %v2119_v27 = vmul.f32 %v2117_v54, %v2116_v38  ;;  %v2632_v29 = vmax.f32 %v2622_v39, 0.0 }
 0x166   :  { %v4698_v31 = vpop.f32.mrf.mxu0  ;;  %v3492_v5 = vadd.f32 %v3491_v41, %v3410_v53  ;;  %v572_v41 = vmul.f32 %v570_v48, %v569_v0  ;;  %v2118_v57 = vmul.f32 %v2117_v54, %v2115_v47 }
 0x167   :  { %v3583_v36 = vadd.f32 %v4698_v31, %v3500_v55  ;;  %v571_v31 = vmul.f32 %v570_v48, %v568_v26  ;;  %v2636_v48 = vmul.f32 %v2634_v62, %v2633_v18  ;;  %v3149_v2 = vmax.f32 %v3139_v43, 0.0 }
 0x168   :  { %v3576_v32 = vpop.f32.mrf.mxu0  ;;  %v1089_v20 = vadd.f32 %v1085_v13, %v572_v41  ;;  %v2635_v61 = vmul.f32 %v2634_v62, %v2632_v29 }
 0x169   :  { %v4705_v12 = vpop.f32.mrf.mxu1  ;;  %v3577_v3 = vadd.f32 %v3576_v32, %v3492_v5  ;;  %v1088_v7 = vadd.f32 %v1084_v16, %v571_v31  ;;  %v3150_v32 = vmax.f32 %v3145_v46, 0.0  ;;  %v3152_v54 = vmul.f32 %v3151_v11, %v3149_v2 }
 0x16a   :  { %v3662_v52 = vadd.f32 %v4705_v12, %v3583_v36  ;;  %v1606_v55 = vadd.f32 %v1602_v42, %v1089_v20 }
 0x16b   :  { %v3655_v56 = vpop.f32.mrf.mxu1  ;;  %v1605_v17 = vadd.f32 %v1601_v19, %v1088_v7  ;;  %v3153_v0 = vmul.f32 %v3151_v11, %v3150_v32 }
 0x16c   :  { %v4712_v34 = vpop.f32.mrf.mxu0  ;;  %v3656_v33 = vadd.f32 %v3655_v56, %v3577_v3  ;;  %v3667_v12 = vmax.f32 %v3662_v52, 0.0  ;;  %v2123_v60 = vadd.f32 %v2119_v27, %v1606_v55 }
 0x16d   :  { %v2122_v56 = vadd.f32 %v2118_v57, %v1605_v17 }
 0x16e   :  { %v3753_v24 = vpop.f32.mrf.mxu0  ;;  %v3666_v45 = vmax.f32 %v3656_v33, 0.0  ;;  %v2640_v4 = vadd.f32 %v2636_v48, %v2123_v60  ;;  %v3670_v8 = vmul.f32 %v3668_v58, %v3667_v12 }
 0x16f   :  { %v4719_v37 = vpop.f32.mrf.mxu1  ;;  %v2639_v23 = vadd.f32 %v2635_v61, %v2122_v56 }
 0x170   :  { %v3851_v40 = vadd.f32 %v4719_v37, %v4712_v34  ;;  %v3157_v26 = vadd.f32 %v3153_v0, %v2640_v4  ;;  %v3669_v13 = vmul.f32 %v3668_v58, %v3666_v45 }
 0x171   :  { %v3844_v35 = vpop.f32.mrf.mxu1  ;;  %v3156_v10 = vadd.f32 %v3152_v54, %v2639_v23 }
 0x172   :  { %v3845_v49 = vadd.f32 %v3844_v35, %v3753_v24  ;;  %v4726_v50 = vpop.f32.mrf.mxu0  ;;  %v4185_v24 = vstv %s5239_s4  ;;  %v3674_v36 = vadd.f32 %v3670_v8, %v3157_v26 }
 0x173   :  { %v3934_v53 = vadd.f32 %v4726_v50, %v3851_v40  ;;  %v3673_v38 = vadd.f32 %v3669_v13, %v3156_v10 }
 0x174   :  { %v3926_v51 = vpop.f32.mrf.mxu0 }
 0x175   :  { %v3927_v44 = vadd.f32 %v3926_v51, %v3845_v49  ;;  %v4733_v14 = vpop.f32.mrf.mxu1 }
 0x176   :  { %v4017_v21 = vadd.f32 %v4733_v14, %v3934_v53 }
 0x177   :  { %v4008_v59 = vpop.f32.mrf.mxu1 }
 0x178   :  { %v4009_v34 = vadd.f32 %v4008_v59, %v3927_v44  ;;  %v4740_v63 = vpop.f32.mrf.mxu0 }
 0x179   :  { %v4100_v1 = vadd.f32 %v4740_v63, %v4017_v21 }
 0x17a   :  { %v4093_v5 = vpop.f32.mrf.mxu0  ;;  %v4747_v6 = vpop.f32.mrf.mxu1 }
 0x17b   :  { %v4094_v22 = vadd.f32 %v4093_v5, %v4009_v34  ;;  %v4179_v9 = vadd.f32 %v4747_v6, %v4100_v1 }
 0x17c   :  { %v4172_v25 = vpop.f32.mrf.mxu1 }
 0x17d   :  { %v4184_v28 = vmax.f32 %v4179_v9, 0.0  ;;  %v4173_v62 = vadd.f32 %v4172_v25, %v4094_v22 }
 0x17f   :  { %v4187_v37 = vmul.f32 %v4185_v24, %v4184_v28  ;;  %v4183_v15 = vmax.f32 %v4173_v62, 0.0 }
 0x181   :  { %v4186_v30 = vmul.f32 %v4185_v24, %v4183_v15  ;;  %v4191_v39 = vadd.f32 %v4187_v37, %v3674_v36 }
 0x183   :  { %v4190_v11 = vadd.f32 %v4186_v30, %v3673_v38  ;;  %4193 = vst [vmem:[#allocation9 + $0x8] sm:$0xff] %v4191_v39 }
 0x185   :  { %4192 = vst [vmem:[#allocation9] sm:$0xff] %v4190_v11 }
 0x186   :  { %4813 = shalt.err (!%p4810_p0)
}
 0x187   :  { %4205 = dma.vmem_to_hbm [thread:$0]  %s4200_s6, 256, %s5252_s3, [#allocation4], %s4832_s18, %s4832_s18, %s4833_s19  }
 0x188   :  { %4828 = dma.done.wait [#allocation4], 256  }
 0x189   :  { %4829 = vsyncadd [#allocation4], 4294967040 }
 0x18a   :  { %4209 = vsyncpa [#allocation3], 1 }
 0x18b   :  { %4210 = vsyncpa [#allocation8], 1 }
 0x18c   :  { %4211 = vsyncpa [#allocation4], 1 }
 0x18d   :  { %4212 = vsyncpa [#allocation5], 1 }

</bundles_post_ra>
